<compile_context>
chip_gen: v5e
topology: v5e:2x2
jax: 0.10.0
libtpu: 0.0.40
codegen_flags: <defaults>
</compile_context>

<pallas_src>
import functools

import jax
import jax.numpy as jnp
from jax.experimental import pallas as pl
from jax.experimental.pallas import tpu as pltpu


def fused_sage_kernel(x0_ref, a_ref, wl_ref, wcat_ref, bcat_ref, o_ref, buf_ref):
    """One grid step = one (layer, node-row-tile) of the fused GraphSAGE stack.

    x0_ref   [N, HP]       bf16  padded input features (resident across the grid)
    a_ref    [TM, N]       bf16  row tile of the row-normalized dense adjacency
    wl_ref   [1, HP, HP]   bf16  BN-folded lin_l weight of the current layer
    wcat_ref [1, HP, 2HP]  bf16  [BN-folded lin_r | skip Linear] concatenated
    bcat_ref [1, 1, 2HP]   f32   [BN-folded conv bias | skip bias]
    o_ref    [TM, HP]      f32   layer-output tile (only the last layer's survives)
    buf_ref  [2N, HP]      bf16  ping-pong activation state (layer input / output)
    """
    l = pl.program_id(0)   # layer index     (sequential dependency)
    i = pl.program_id(1)   # row-tile index  (sequential: shares buf_ref state)

    n, hp = x0_ref.shape
    tm = a_ref.shape[0]

    # Stage the padded input features into ping-pong slot 0, once.
    @pl.when(jnp.logical_and(l == 0, i == 0))
    def _():
        buf_ref[pl.ds(0, n), :] = x0_ref[...]

    cur = (l % 2) * n          # slot holding layer l's input
    nxt = ((l + 1) % 2) * n    # slot receiving layer l's output
    row = i * tm

    cur_start = pl.multiple_of(cur, tm)
    src_start = pl.multiple_of(cur + row, tm)
    dst_start = pl.multiple_of(nxt + row, tm)

    x_full = buf_ref[pl.ds(cur_start, n), :]      # [N, HP]  all nodes (for aggregation)
    x_tile = buf_ref[pl.ds(src_start, tm), :]     # [TM, HP] this tile's rows

    wl = wl_ref[0]                                # [HP, HP]
    wcat = wcat_ref[0]                            # [HP, 2HP]
    bcat = bcat_ref[0]                            # [1, 2HP]

    # lin_r (BN-folded) and the skip Linear share LHS x -> one 2HP-wide MXU pass.
    y = jnp.dot(x_tile, wcat, preferred_element_type=jnp.float32) + bcat   # [TM, 2HP]
    y_root = y[:, :hp]
    y_skip = y[:, hp:]

    # Mean aggregation (A is row-normalized) followed by the BN-folded lin_l.
    aggr = jnp.dot(a_ref[...], x_full, preferred_element_type=jnp.float32)  # [TM, HP]
    h = jnp.dot(aggr.astype(jnp.bfloat16), wl,
                preferred_element_type=jnp.float32) + y_root                # [TM, HP]

    out = jnp.maximum(h, 0.0) + y_skip            # relu(BN(conv)) + skip

    # TODO(synk): dropout here (train-mode only); identity in eval mode.
    buf_ref[pl.ds(dst_start, tm), :] = out.astype(jnp.bfloat16)
    o_ref[...] = out


def fused_graphsage_layers(x, a, wl_s, wcat_s, bcat_s, *, tile_m):
    num_layers, hp, hp2 = wcat_s.shape
    n, c = x.shape
    assert n % tile_m == 0, "num_nodes must be a multiple of the row tile"

    # Zero-pad feature channels to the lane-dense padded width; cast the matmul
    # operands (features + adjacency) to bf16 (accumulation stays f32 in-kernel).
    x_p = jnp.pad(x, ((0, 0), (0, hp - c))).astype(jnp.bfloat16)
    a_b = a.astype(jnp.bfloat16)

    grid = (num_layers, n // tile_m)

    flops = num_layers * (2 * n * n * hp + 2 * n * hp * hp + 2 * n * hp * hp2)
    bytes_accessed = (num_layers * a_b.size * 2 + x_p.size * 2
                      + wl_s.size * 2 + wcat_s.size * 2 + bcat_s.size * 4
                      + n * hp * 4)

    return pl.pallas_call(
        fused_sage_kernel,
        out_shape=jax.ShapeDtypeStruct((n, hp), jnp.float32),
        grid_spec=pltpu.PrefetchScalarGridSpec(
            num_scalar_prefetch=0,
            grid=grid,
            in_specs=[
                pl.BlockSpec((n, hp), lambda l, i: (0, 0)),            # x0 (VMEM-resident)
                pl.BlockSpec((tile_m, n), lambda l, i: (i, 0)),        # A row tile (pipelined)
                pl.BlockSpec((1, hp, hp), lambda l, i: (l, 0, 0)),     # Wl' (BN-folded)
                pl.BlockSpec((1, hp, hp2), lambda l, i: (l, 0, 0)),    # [Wr' | Wskip]
                pl.BlockSpec((1, 1, hp2), lambda l, i: (l, 0, 0)),     # [b' | bskip]
            ],
            out_specs=pl.BlockSpec((tile_m, hp), lambda l, i: (i, 0)),
            scratch_shapes=[pltpu.VMEM((2 * n, hp), jnp.bfloat16)],    # ping-pong activations
        ),
        compiler_params=pltpu.CompilerParams(
            # Both axes are sequential: the layer axis is a true dependency and the
            # row-tile axis shares the in-VMEM ping-pong activation state.
            dimension_semantics=("arbitrary", "arbitrary"),
            vmem_limit_bytes=48 * 1024 * 1024,   # headroom; stays under v7x's 64 MiB/TC
        ),
        cost_estimate=pl.CostEstimate(flops=flops, transcendentals=0,
                                      bytes_accessed=bytes_accessed),
    )(x_p, a_b, wl_s, wcat_s, bcat_s)


@functools.partial(jax.jit, static_argnames=("hidden_channels", "tile_m"))
def graphsage_forward(x, a, wl_s, wcat_s, bcat_s, hidden_channels, tile_m):
    out = fused_graphsage_layers(x, a, wl_s, wcat_s, bcat_s, tile_m=tile_m)
    return out[:, :hidden_channels]


def make_params(key, in_channels, hidden_channels, num_layers):
    """Deterministic synthetic parameters matching the PyTorch module ([in, out] layout)."""
    params = []
    dims_in = [in_channels] + [hidden_channels] * (num_layers - 1)
    for cin in dims_in:
        key, k1, k2, k3, k4, k5 = jax.random.split(key, 6)
        s = 1.0 / jnp.sqrt(jnp.float32(cin))
        params.append(dict(
            wl=jax.random.uniform(k1, (cin, hidden_channels), jnp.float32, -s, s),
            wr=jax.random.uniform(k2, (cin, hidden_channels), jnp.float32, -s, s),
            bl=jax.random.uniform(k3, (1, hidden_channels), jnp.float32, -s, s),
            ws=jax.random.uniform(k4, (cin, hidden_channels), jnp.float32, -s, s),
            bs=jax.random.uniform(k5, (1, hidden_channels), jnp.float32, -s, s),
            gamma=jnp.ones((1, hidden_channels), jnp.float32),
            beta=jnp.zeros((1, hidden_channels), jnp.float32),
            mean=jnp.zeros((1, hidden_channels), jnp.float32),
            var=jnp.ones((1, hidden_channels), jnp.float32),
        ))
    return params


def fold_and_stack_params(params, padded_dim):
    """Host-side, once: fold eval-mode BN into the conv weights, fuse lin_r with the
    skip Linear column-wise, zero-pad channels to `padded_dim`, stack per layer."""
    hp = padded_dim
    wl_l, wcat_l, bcat_l = [], [], []
    for p in params:
        cin, hid = p["wl"].shape
        assert cin <= hp and hid <= hp

        scale = p["gamma"] / jnp.sqrt(p["var"] + 1e-5)          # [1, H]
        wl = p["wl"] * scale                                    # BN folded
        wr = p["wr"] * scale
        b_conv = (p["bl"] - p["mean"]) * scale + p["beta"]

        def pad_w(w):
            return jnp.pad(w, ((0, hp - w.shape[0]), (0, hp - w.shape[1])))

        def pad_b(b):
            return jnp.pad(b, ((0, 0), (0, hp - b.shape[1])))

        wl_l.append(pad_w(wl))
        wcat_l.append(jnp.concatenate([pad_w(wr), pad_w(p["ws"])], axis=1))      # [HP, 2HP]
        bcat_l.append(jnp.concatenate([pad_b(b_conv), pad_b(p["bs"])], axis=1))  # [1, 2HP]

    wl_s = jnp.stack(wl_l).astype(jnp.bfloat16)      # [L, HP, HP]
    wcat_s = jnp.stack(wcat_l).astype(jnp.bfloat16)  # [L, HP, 2HP]
    bcat_s = jnp.stack(bcat_l).astype(jnp.float32)   # [L, 1, 2HP]
    return wl_s, wcat_s, bcat_s


def build_norm_adjacency(edge_index, num_nodes):
    """A[i, j] = 1/deg_in(i) for each edge j -> i (PyG mean aggregation, max(deg,1))."""
    src, dst = edge_index[0], edge_index[1]
    adj = jnp.zeros((num_nodes, num_nodes), jnp.float32).at[dst, src].add(1.0)
    deg = adj.sum(axis=1, keepdims=True)
    return adj / jnp.maximum(deg, 1.0)


def reference_forward(x, a, params):
    """Pure-JAX f32 reference using the original (unfolded, unpadded) parameters."""
    for p in params:
        x_skip = x @ p["ws"] + p["bs"]
        aggr = a @ x
        h = aggr @ p["wl"] + p["bl"] + x @ p["wr"]
        h = (h - p["mean"]) / jnp.sqrt(p["var"] + 1e-5) * p["gamma"] + p["beta"]
        x = jnp.maximum(h, 0.0) + x_skip
    return x


if __name__ == "__main__":
    N = 32          # num nodes (multiple of TILE_M)
    IN_CH = 8       # in_channels
    HID = 32        # hidden_channels
    LAYERS = 3
    E = 96          # num edges
    TILE_M = 16     # node-row tile (bf16 sublane packing); use >= 256 at real N
    PAD = 128       # lane-dense padded channel width

    key = jax.random.PRNGKey(0)
    kx, ke, kp = jax.random.split(key, 3)
    x = jax.random.normal(kx, (N, IN_CH), jnp.float32)
    edge_index = jax.random.randint(ke, (2, E), 0, N, jnp.int32)
    params = make_params(kp, IN_CH, HID, LAYERS)

    # Static graph / static weights: densify+normalize the adjacency and fold BN
    # into the weights once, outside the jitted forward.
    a = build_norm_adjacency(edge_index, N)
    wl_s, wcat_s, bcat_s = fold_and_stack_params(params, PAD)

    out = graphsage_forward(x, a, wl_s, wcat_s, bcat_s,
                            hidden_channels=HID, tile_m=TILE_M)
    out = jax.block_until_ready(out)
    assert out.shape == (N, HID), out.shape
    assert bool(jnp.all(jnp.isfinite(out)))

    # Sanity check against the f32 reference (kernel uses bf16 operands -> loose tol).
    ref = reference_forward(x, a, params)
    err = float(jnp.max(jnp.abs(out - ref)))
    assert err < 0.3, f"max abs error vs f32 reference too large: {err}"
    print("KERNEL_OK")
</pallas_src>

<mosaic_0001>
module attributes {stable_mosaic.version = 11 : i64} {
  func.func @fused_sage_kernel(%arg0: i32, %arg1: i32, %arg2: memref<32x128xbf16, #tpu.memory_space<vmem>>, %arg3: memref<16x32xbf16, #tpu.memory_space<vmem>>, %arg4: memref<1x128x128xbf16, #tpu.memory_space<vmem>>, %arg5: memref<1x128x256xbf16, #tpu.memory_space<vmem>>, %arg6: memref<1x1x256xf32, #tpu.memory_space<vmem>>, %arg7: memref<16x128xf32, #tpu.memory_space<vmem>>, %arg8: memref<64x128xbf16, #tpu.memory_space<vmem>>) attributes {dimension_semantics = [#tpu.dimension_semantics<arbitrary>, #tpu.dimension_semantics<arbitrary>], iteration_bounds = array<i64: 3, 2>, scalar_prefetch = 0 : i64, scratch_operands = 1 : i64, tpu.core_type = #tpu.core_type<tc>, window_params = [{pipeline_mode = #tpu.pipeline_mode<synchronous>, transform_indices = @transform_0, window_bounds = array<i64: 32, 128>}, {transform_indices = @transform_1, window_bounds = array<i64: 16, 32>}, {transform_indices = @transform_2, window_bounds = array<i64: 1, 128, 128>}, {transform_indices = @transform_3, window_bounds = array<i64: 1, 128, 256>}, {transform_indices = @transform_4, window_bounds = array<i64: 1, 1, 256>}, {transform_indices = @transform_5, window_bounds = array<i64: 16, 128>}]} {
    %c0_i32 = arith.constant 0 : i32
    %0 = arith.cmpi eq, %arg0, %c0_i32 : i32
    %c0_i32_0 = arith.constant 0 : i32
    %1 = arith.cmpi eq, %arg1, %c0_i32_0 : i32
    %2 = arith.andi %0, %1 : i1
    %3 = arith.extui %2 : i1 to i32
    %c0_i32_1 = arith.constant 0 : i32
    %4 = arith.cmpi ne, %3, %c0_i32_1 : i32
    scf.if %4 {
      %c0_32 = arith.constant 0 : index
      %c0_33 = arith.constant 0 : index
      %61 = vector.load %arg2[%c0_32, %c0_33] : memref<32x128xbf16, #tpu.memory_space<vmem>>, vector<32x128xbf16>
      %c0_34 = arith.constant 0 : index
      %c0_35 = arith.constant 0 : index
      %62 = vector.load %arg8[%c0_34, %c0_35] : memref<64x128xbf16, #tpu.memory_space<vmem>>, vector<32x128xbf16>
      tpu.vector_store %arg8[%c0_34, %c0_35], %61 {strides = array<i32>} : memref<64x128xbf16, #tpu.memory_space<vmem>>, vector<32x128xbf16>,
    } else {
    }
    %c2_i32 = arith.constant 2 : i32
    %c0_i32_2 = arith.constant 0 : i32
    %5 = arith.cmpi eq, %c2_i32, %c0_i32_2 : i32
    %c1_i32 = arith.constant 1 : i32
    %6 = arith.select %5, %c1_i32, %c2_i32 : i32
    %7 = arith.remsi %arg0, %6 : i32
    %c0_i32_3 = arith.constant 0 : i32
    %8 = arith.cmpi ne, %7, %c0_i32_3 : i32
    %c0_i32_4 = arith.constant 0 : i32
    %9 = arith.cmpi slt, %7, %c0_i32_4 : i32
    %c0_i32_5 = arith.constant 0 : i32
    %10 = arith.cmpi slt, %6, %c0_i32_5 : i32
    %11 = arith.xori %9, %10 : i1
    %12 = arith.andi %11, %8 : i1
    %13 = arith.addi %7, %6 : i32
    %14 = arith.select %12, %13, %7 : i32
    %c32_i32 = arith.constant 32 : i32
    %15 = arith.muli %14, %c32_i32 : i32
    %c1_i32_6 = arith.constant 1 : i32
    %16 = arith.addi %arg0, %c1_i32_6 : i32
    %c2_i32_7 = arith.constant 2 : i32
    %c0_i32_8 = arith.constant 0 : i32
    %17 = arith.cmpi eq, %c2_i32_7, %c0_i32_8 : i32
    %c1_i32_9 = arith.constant 1 : i32
    %18 = arith.select %17, %c1_i32_9, %c2_i32_7 : i32
    %19 = arith.remsi %16, %18 : i32
    %c0_i32_10 = arith.constant 0 : i32
    %20 = arith.cmpi ne, %19, %c0_i32_10 : i32
    %c0_i32_11 = arith.constant 0 : i32
    %21 = arith.cmpi slt, %19, %c0_i32_11 : i32
    %c0_i32_12 = arith.constant 0 : i32
    %22 = arith.cmpi slt, %18, %c0_i32_12 : i32
    %23 = arith.xori %21, %22 : i1
    %24 = arith.andi %23, %20 : i1
    %25 = arith.addi %19, %18 : i32
    %26 = arith.select %24, %25, %19 : i32
    %c32_i32_13 = arith.constant 32 : i32
    %27 = arith.muli %26, %c32_i32_13 : i32
    %c16_i32 = arith.constant 16 : i32
    %28 = arith.muli %arg1, %c16_i32 : i32
    %29 = tpu.assume_multiple %15, 16 : i32
    %30 = arith.addi %15, %28 : i32
    %31 = tpu.assume_multiple %30, 16 : i32
    %32 = arith.addi %27, %28 : i32
    %33 = tpu.assume_multiple %32, 16 : i32
    %34 = arith.index_cast %29 : i32 to index
    %c0 = arith.constant 0 : index
    %35 = vector.load %arg8[%34, %c0] : memref<64x128xbf16, #tpu.memory_space<vmem>>, vector<32x128xbf16>
    %36 = arith.index_cast %31 : i32 to index
    %c0_14 = arith.constant 0 : index
    %37 = vector.load %arg8[%36, %c0_14] : memref<64x128xbf16, #tpu.memory_space<vmem>>, vector<16x128xbf16>
    %c0_15 = arith.constant 0 : index
    %c0_16 = arith.constant 0 : index
    %c0_17 = arith.constant 0 : index
    %38 = vector.load %arg4[%c0_15, %c0_16, %c0_17] : memref<1x128x128xbf16, #tpu.memory_space<vmem>>, vector<1x128x128xbf16>
    %39 = vector.shape_cast %38 : vector<1x128x128xbf16> to vector<128x128xbf16>
    %c0_18 = arith.constant 0 : index
    %c0_19 = arith.constant 0 : index
    %c0_20 = arith.constant 0 : index
    %40 = vector.load %arg5[%c0_18, %c0_19, %c0_20] : memref<1x128x256xbf16, #tpu.memory_space<vmem>>, vector<1x128x256xbf16>
    %41 = vector.shape_cast %40 : vector<1x128x256xbf16> to vector<128x256xbf16>
    %c0_21 = arith.constant 0 : index
    %c0_22 = arith.constant 0 : index
    %c0_23 = arith.constant 0 : index
    %42 = vector.load %arg6[%c0_21, %c0_22, %c0_23] : memref<1x1x256xf32, #tpu.memory_space<vmem>>, vector<1x1x256xf32>
    %43 = vector.shape_cast %42 : vector<1x1x256xf32> to vector<1x256xf32>
    %cst = arith.constant dense<0.000000e+00> : vector<16x256xf32>
    %44 = tpu.matmul %37, %41, %cst {dimension_numbers = #tpu.dot_dimension_numbers<[1], [0], [0], [1], [0, 0, 1, 1], [], []>} : vector<16x128xbf16>, vector<128x256xbf16>, vector<16x256xf32> -> vector<16x256xf32>
    %45 = vector.broadcast %43 : vector<1x256xf32> to vector<16x256xf32>
    %46 = arith.addf %44, %45 : vector<16x256xf32>
    %47 = vector.extract_strided_slice %46 {offsets = [0, 0], sizes = [16, 128], strides = [1, 1]} : vector<16x256xf32> to vector<16x128xf32>
    %48 = vector.extract_strided_slice %46 {offsets = [0, 128], sizes = [16, 128], strides = [1, 1]} : vector<16x256xf32> to vector<16x128xf32>
    %c0_24 = arith.constant 0 : index
    %c0_25 = arith.constant 0 : index
    %49 = vector.load %arg3[%c0_24, %c0_25] : memref<16x32xbf16, #tpu.memory_space<vmem>>, vector<16x32xbf16>
    %cst_26 = arith.constant dense<0.000000e+00> : vector<16x128xf32>
    %50 = tpu.matmul %49, %35, %cst_26 {dimension_numbers = #tpu.dot_dimension_numbers<[1], [0], [0], [1], [0, 0, 1, 1], [], []>} : vector<16x32xbf16>, vector<32x128xbf16>, vector<16x128xf32> -> vector<16x128xf32>
    %51 = arith.truncf %50 : vector<16x128xf32> to vector<16x128xbf16>
    %cst_27 = arith.constant dense<0.000000e+00> : vector<16x128xf32>
    %52 = tpu.matmul %51, %39, %cst_27 {dimension_numbers = #tpu.dot_dimension_numbers<[1], [0], [0], [1], [0, 0, 1, 1], [], []>} : vector<16x128xbf16>, vector<128x128xbf16>, vector<16x128xf32> -> vector<16x128xf32>
    %53 = arith.addf %52, %47 : vector<16x128xf32>
    %cst_28 = arith.constant 0.000000e+00 : f32
    %54 = vector.broadcast %cst_28 : f32 to vector<16x128xf32>
    %55 = arith.maximumf %53, %54 : vector<16x128xf32>
    %56 = arith.addf %55, %48 : vector<16x128xf32>
    %57 = arith.truncf %56 : vector<16x128xf32> to vector<16x128xbf16>
    %58 = arith.index_cast %33 : i32 to index
    %c0_29 = arith.constant 0 : index
    %59 = vector.load %arg8[%58, %c0_29] : memref<64x128xbf16, #tpu.memory_space<vmem>>, vector<16x128xbf16>
    tpu.vector_store %arg8[%58, %c0_29], %57 {strides = array<i32>} : memref<64x128xbf16, #tpu.memory_space<vmem>>, vector<16x128xbf16>,
    %c0_30 = arith.constant 0 : index
    %c0_31 = arith.constant 0 : index
    %60 = vector.load %arg7[%c0_30, %c0_31] : memref<16x128xf32, #tpu.memory_space<vmem>>, vector<16x128xf32>
    tpu.vector_store %arg7[%c0_30, %c0_31], %56 {strides = array<i32>} : memref<16x128xf32, #tpu.memory_space<vmem>>, vector<16x128xf32>,
    return
  }
  func.func @transform_0(%arg0: i32, %arg1: i32) -> (i32, i32) {
    %c0_i32 = arith.constant 0 : i32
    %c0_i32_0 = arith.constant 0 : i32
    %c0_i32_1 = arith.constant 0 : i32
    return %c0_i32, %c0_i32_0 : i32, i32
  }
  func.func @transform_1(%arg0: i32, %arg1: i32) -> (i32, i32) {
    %c0_i32 = arith.constant 0 : i32
    %c0_i32_0 = arith.constant 0 : i32
    return %arg1, %c0_i32 : i32, i32
  }
  func.func @transform_2(%arg0: i32, %arg1: i32) -> (i32, i32, i32) {
    %c0_i32 = arith.constant 0 : i32
    %c0_i32_0 = arith.constant 0 : i32
    %c0_i32_1 = arith.constant 0 : i32
    return %arg0, %c0_i32, %c0_i32_0 : i32, i32, i32
  }
  func.func @transform_3(%arg0: i32, %arg1: i32) -> (i32, i32, i32) {
    %c0_i32 = arith.constant 0 : i32
    %c0_i32_0 = arith.constant 0 : i32
    %c0_i32_1 = arith.constant 0 : i32
    return %arg0, %c0_i32, %c0_i32_0 : i32, i32, i32
  }
  func.func @transform_4(%arg0: i32, %arg1: i32) -> (i32, i32, i32) {
    %c0_i32 = arith.constant 0 : i32
    %c0_i32_0 = arith.constant 0 : i32
    %c0_i32_1 = arith.constant 0 : i32
    return %arg0, %c0_i32, %c0_i32_0 : i32, i32, i32
  }
  func.func @transform_5(%arg0: i32, %arg1: i32) -> (i32, i32) {
    %c0_i32 = arith.constant 0 : i32
    %c0_i32_0 = arith.constant 0 : i32
    return %arg1, %c0_i32 : i32, i32
  }
}

</mosaic_0001>

<bundles_post_ra>
// kernel: graphsage_forward.1
= control target key start
LH: loop header
LB: loop body
LE: loop exit
PB: predicated region body
PF: predicated region fallthrough
CT: control target
= control target key end

     0   :  { %s1621_s0 = inlined_call_operand.vmem [shape: bf16[32,128], index: 0, kind: input, shape index: {}]   ;;  %s1622_s1 = inlined_call_operand.vmem [shape: bf16[32,32], index: 1, kind: input, shape index: {}]   ;;  %s1623_s2 = inlined_call_operand.hbm [shape: bf16[3,128,128], index: 2, kind: input, shape index: {}]   ;;  %s1624_s3 = inlined_call_operand.hbm [shape: bf16[3,128,256], index: 3, kind: input, shape index: {}]   ;;  %s1625_s4 = inlined_call_operand.vmem [shape: f32[3,1,256], index: 4, kind: input, shape index: {}]   ;;  %s1626_s5 = inlined_call_operand.hbm [shape: f32[32,128], index: 5, kind: output, shape index: {}]  }
   0x1   :  { %1634 = sst [smem:[#allocation21_spill]] %s1623_s2 }
   0x2   :  { %10 = vsyncpa [#allocation4], 0 }
   0x3   :  { %12 = vsyncpa [#allocation4 + $0x1], 0 }
   0x4   :  { %13 = vsyncpa [#allocation7], 0 }
   0x5   :  { %15 = vsyncpa [#allocation7 + $0x1], 0 }
   0x6   :  { %16 = vsyncpa [#allocation5], 0 }
   0x7   :  { %18 = vsyncpa [#allocation5 + $0x1], 0  ;;  %s1337_s18 = smov 0   ;;  %s1339_s19 = smov 0  }
   0x8   :  { %s1341_s20 = smov 0   ;;  %s1343_s21 = smov 0  }
   0x9   :  { %s1345_s22 = smov 0   ;;  %s1347_s23 = smov 0  }
   0xa   :  { %s1349_s24 = smov 0   ;;  %s1351_s25 = smov 0  }
   0xb   :  { %s1353_s26 = smov 0   ;;  %s1355_s27 = smov 0  }
   0xc   :  { %s1357_s28 = smov 0  }
   0xd LB: > { %1635 = sst [smem:[#allocation12_spill]] %s1259_s18  ;;  %s817_s29 = sadd.s32 4294967295, %s1299_s28   ;;  %s1299_s28 = sphi %s1357_s28, %s24_s28   ;;  %s1295_s27 = sphi %s1355_s27, %s1664_s27   ;;  %s1291_s26 = sphi %s1353_s26, %s1657_s26   ;;  %s1287_s25 = sphi %s1351_s25, %s1663_s25   ;;  %s1283_s24 = sphi %s1349_s24, %s1656_s24   ;;  %s1279_s23 = sphi %s1347_s23, %s1655_s23   ;;  %s1275_s22 = sphi %s1345_s22, %s1662_s22   ;;  %s1271_s21 = sphi %s1343_s21, %s1661_s21   ;;  %s1267_s20 = sphi %s1341_s20, %s1653_s20   ;;  %s1263_s19 = sphi %s1339_s19, %s1660_s19   ;;  %s1259_s18 = sphi %s1337_s18, %s1659_s18  }
   0xe   : > { %1636 = sst [smem:[#allocation13_spill]] %s1267_s20  ;;  %s818_s30 = sadd.s32 4294967294, %s1299_s28  }
   0xf   : > { %1637 = sst [smem:[#allocation14_spill]] %s1279_s23  ;;  %s33_s6 = sadd.s32 1, %s1291_s26 }
  0x10   : > { %1638 = sst [smem:[#allocation15_spill]] %s1291_s26  ;;  %s36_s7 = sadd.s32 1, %s1295_s27 }
  0x11   : > { %p34_p0 = scmp.ge.s32.totalorder %s33_s6, 2  ;;  %s90_s8 = sadd.s32 1, %s1279_s23 }
  0x12   : > { %p97_p1 = scmp.ne.s32.totalorder %s1279_s23, %s1275_s22  ;;  %p98_p2 = scmp.eq.s32.totalorder %s1299_s28, 0 }
  0x13   : > { %s1666_s6 = smov (%p34_p0, %s33_s6), 0  ;;  %s1668_s7 = smov (!%p34_p0, %s36_s7), %s1295_s27 }
  0x14   : > { %1639 = sst [smem:[#allocation16_spill]] %s1666_s6  ;;  %p1401_p3 = por %p98_p2, %p97_p1 }
  0x15   : > { %p103_p4 = scmp.ne.s32.totalorder %s1275_s22, %s1271_s21  ;;  %p38_p5 = scmp.ge.s32.totalorder %s1668_s7, 3 }
  0x16   : > { %p104_p6 = scmp.eq.s32.totalorder %s817_s29, 0  ;;  %s165_s10 = ssub.s32 %s1291_s26, %s1666_s6 }
  0x17   : > { %s168_s11 = sadd.s32 1, %s1267_s20  ;;  %s1670_s7 = smov (%p38_p5, %s1668_s7), 0 }
  0x18   : > { %1641 = sst [smem:[#allocation17_spill]] %s1670_s7  ;;  %p1411_p7 = por %p104_p6, %p103_p4 }
  0x19   : > { %p166_p8 = scmp.eq.s32.totalorder %s165_s10, 0  ;;  %s87_s13 = ssub.s32 %s1295_s27, %s1670_s7 }
  0x1a   : > { %p178_p9 = scmp.ne.s32.totalorder %s1267_s20, %s1263_s19  ;;  %p88_p10 = scmp.eq.s32.totalorder %s87_s13, 0 }
  0x1b   : > { %p179_p11 = scmp.eq.s32.totalorder %s817_s29, 5  ;;  %p184_p13 = scmp.ne.s32.totalorder %s1263_s19, %s1259_s18 }
  0x1c   : > { %s1420_s14 = scalar_select %p166_p8, %s1267_s20, %s168_s11  }
  0x1d   : > { %s1423_s15 = scalar_select %p88_p10, %s1279_s23, %s90_s8  }
  0x1e   : > { %1643 = sst [smem:[#allocation18_spill]] %s1420_s14  ;;  %p1425_p12 = por %p179_p11, %p178_p9 }
  0x1f   : > { %1644 = sst [smem:[#allocation19_spill]] %s1423_s15  ;;  %p185_p0 = scmp.eq.s32.totalorder %s818_s30, 5 }
  0x20   : > { %p1017_p1 = scmp.lt.s32.totalorder %s1299_s28, 6  ;;  %s1433_s17 = sand.u32 1, %s1279_s23  }
  0x21   : > { %p1435_p2 = por %p185_p0, %p184_p13  ;;  %s821_s29 = sshll.u32 %s1433_s17, 6 }
  0x22   : > { %s964_s8 = sshll.u32 %s1295_s27, 6  ;;  %s1648_s2 = sld [smem:[#allocation21_spill]] }
  0x23   : > { %s1646_s21 = scalar_select %p1435_p2, 1, 0 }
  0x24   : > { %s221_s6 = scalar_lea.vmem [#allocation3], %s821_s29  ;;  %p1446_p4 = pnand %p1017_p1, %p1401_p3 }
  0x25   : > { %1647 = sst [smem:[#allocation20_spill]] %s1646_s21  ;;  %s229_s30 = sshll.u32 %s221_s6, 4  ;;  %s230_s30 = int_to_ptr.vmem [resolvable:$true] %s229_s30 }
  0x26   : > { %p827_p5 = scmp.ge.s32.totalorder %s1299_s28, 1  ;;  %p266_p6 = scmp.lt.s32.totalorder %s1299_s28, 7 }
  0x27   : > { %s218_s15 = scalar_lea.sflag [#allocation4], %s1433_s17  ;;  %s1301_s23 = smov 64  }
  0x28   : > { %s226_s13 = scalar_lea.hbm %s1648_s2, %s964_s8  ;;  %s1302_s10 = smov 4  }
  0x29   : > { %s227_s7 = sshll.u32 %s226_s13, 4  ;;  %p267_p8 = pnand %p827_p5, %p266_p6  ;;  %s228_s7 = int_to_ptr.hbm [resolvable:$true] %s227_s7 }
  0x2a   : > { %1009 = dma.hbm_to_vmem [thread:$0]  (!%p1446_p4), %s228_s7, 1024, %s230_s30, %s218_s15, %s1301_s23, %s1301_s23, %s1302_s10  }
  0x2b   : > { %s824_s29 = sshll.u32 %s1433_s17, 7  ;;  %s965_s6 = sshll.u32 %s1295_s27, 7 }
  0x2c   : > { %s248_s9 = scalar_lea.hbm %s1624_s3, %s965_s6  ;;  %s243_s2 = scalar_lea.vmem [#allocation6], %s824_s29 }
  0x2d   : > { %s249_s13 = sshll.u32 %s248_s9, 4  ;;  %s251_s14 = sshll.u32 %s243_s2, 4  ;;  %s250_s13 = int_to_ptr.hbm [resolvable:$true] %s249_s13  ;;  %s252_s14 = int_to_ptr.vmem [resolvable:$true] %s251_s14 }
  0x2e   : > { %s240_s20 = scalar_lea.sflag [#allocation7], %s1433_s17  ;;  %s1303_s21 = smov 128  }
  0x2f   : > { %s1304_s18 = smov 8   ;;  %270 = sbr.rel (%p267_p8) target bundleno = 386 (0x182), region = 40 }
  0x30   : > { %1012 = dma.hbm_to_vmem [thread:$0]  (!%p1446_p4), %s250_s13, 2048, %s252_s14, %s240_s20, %s1303_s21, %s1303_s21, %s1304_s18  }
  0x31   : > { %s272_s23 = sand.u32 (!%p267_p8), 1, %s1275_s22  }
  0x32   : > { %s828_s7 = sshll.u32 (!%p267_p8), %s272_s23, 6  ;;  %s273_s15 = scalar_lea.sflag (!%p267_p8), [#allocation4], %s272_s23 }
  0x33   : > { %s1464_s30 = scalar_lea.vmem (!%p267_p8), [#allocation3], %s828_s7 }
  0x34   : > { %1246 = dma.done.wait (%p1411_p7), %s273_s15, 1024  }
  0x35   : > { %1248 = vsyncadd (%p1411_p7), %s273_s15, 4294966272  ;;  %s829_s2 = sshll.u32 %s272_s23, 7  ;;  %s283_s17 = scalar_lea.sflag [#allocation7], %s272_s23 }
  0x36   : > { %s1470_s10 = scalar_lea.vmem [#allocation6], %s829_s2 }
  0x37   : > { %1250 = dma.done.wait (%p1411_p7), %s283_s17, 2048  }
  0x38   : > { %1252 = vsyncadd (%p1411_p7), %s283_s17, 4294965248  ;;  %s325_s18 = sand.u32 1, %s1263_s19   ;;  %s831_s20 = sshll.u32 %s1283_s24, 1 }
  0x39   : > { %s830_s26 = sshll.u32 %s325_s18, 4  ;;  %p329_p3 = scmp.lt.s32.totalorder %s831_s20, 3 }
  0x3a   : > { %p334_p9 = scmp.lt.s32.totalorder %s1287_s25, 2  ;;  %p340_p10 = scmp.eq.s32.totalorder %s1287_s25, 0 }
  0x3b   : > { %s1672_s20 = smov (!%p329_p3, %s831_s20), 3  ;;  %p341_p7 = scmp.eq.s32.totalorder %s1283_s24, 0 }
  0x3c   : > { %s335_s14 = scalar_select %p334_p9, %s1287_s25, 2 }
  0x3d   : > { %s832_s21 = sshll.u32 %s1672_s20, 2  ;;  %p342_p11 = pnand %p341_p7, %p340_p10 }
  0x3e   : > { %s1486_s6 = scalar_lea.vmem %s1622_s1, %s832_s21  ;;  %s833_s8 = sshll.u32 %s335_s14, 1 }
  0x3f   : > { %s1491_s13 = scalar_lea.vmem %s1625_s4, %s833_s8  ;;  %s1494_s23 = scalar_lea.vmem [#allocation8], %s830_s26 }
  0x40   : > { %345 = sbr.rel (%p342_p11) target bundleno = 72 (0x48), region = 52 }
  0x45   : > { %v346_v0 = vld [vmem:[%s1621_s0] sm:$0xff]   ;;  %v348_v1 = vld [vmem:[%s1621_s0 + $0x8] sm:$0xff]  }
  0x46   : > { %350 = vst [vmem:[#allocation2] sm:$0xff] %v346_v0  }
  0x47   : > { %352 = vst [vmem:[#allocation2 + $0x8] sm:$0xff] %v348_v1  }
  0x48 PF: > { %p354_p13 = scmp.lt.s32.totalorder %s1287_s25, 0  ;;  %s355_s20 = ssub.s32 0, %s1287_s25  ;;  %v907_v2 = vld [vmem:[%s1470_s10 + $0x70] sm:$0xf]  ;;  %v992_v3 = vld [vmem:[%s1470_s10 + $0x74] sm:$0xf0] }
  0x49   : > { %s834_s26 = smin.u32 %s1287_s25, %s355_s20  ;;  %v899_v4 = vld [vmem:[%s1470_s10 + $0x60] sm:$0xf]  ;;  %v990_v5 = vld [vmem:[%s1470_s10 + $0x64] sm:$0xf0]  ;;  %v908_v6 = vor.u32 %v992_v3, %v907_v2  ;;  %v991_v7 = vld [vmem:[%s1470_s10 + $0x74] sm:$0xf] }
  0x4a   : > { %s357_s14 = sand.u32 1, %s834_s26   ;;  %v909_v8 = vld [vmem:[%s1470_s10 + $0x78] sm:$0xf0]  ;;  %v900_v11 = vor.u32 %v990_v5, %v899_v4  ;;  %v989_v12 = vld [vmem:[%s1470_s10 + $0x64] sm:$0xf]  ;;  %v975_v14 = vld [vmem:[%s1464_s30 + $0x30] sm:$0xff] }
  0x4b   : > { %v976_v9 = vld [vmem:[%s1464_s30 + $0x38] sm:$0xff]  ;;  %s358_s21 = ssub.s32 0, %s357_s14  ;;  %v912_v10 = vor.u32 %v991_v7, %v909_v8  ;;  %522 = vmatpush.bf16.msra.mxu0 %v908_v6  ;;  %v901_v13 = vld [vmem:[%s1470_s10 + $0x68] sm:$0xf0]  ;;  %v891_v15 = vld [vmem:[%s1470_s10 + $0x50] sm:$0xf] }
  0x4c   : > { %s1674_s21 = smov (!%p354_p13, %s358_s21), %s357_s14  ;;  %636 = vmatpush.bf16.msra.mxu3 %v976_v9  ;;  %v988_v16 = vld [vmem:[%s1470_s10 + $0x54] sm:$0xf0]  ;;  %v904_v17 = vor.u32 %v989_v12, %v901_v13  ;;  %v987_v18 = vld [vmem:[%s1470_s10 + $0x54] sm:$0xf]  ;;  %v893_v19 = vld [vmem:[%s1470_s10 + $0x58] sm:$0xf0] }
  0x4d   : > { %536 = vmatpush.bf16.msra.mxu1 %v912_v10  ;;  %p836_p0 = scmp.lt.s32.totalorder %s1674_s21, 0  ;;  %s364_s29 = sadd.s32 2, %s1674_s21  ;;  %v892_v20 = vor.u32 %v988_v16, %v891_v15  ;;  %v974_v21 = vld [vmem:[%s1464_s30 + $0x28] sm:$0xff]  ;;  %v883_v22 = vld [vmem:[%s1470_s10 + $0x40] sm:$0xf]  ;;  %v896_v24 = vor.u32 %v987_v18, %v893_v19  ;;  %v972_v40 = vld [vmem:[%s1464_s30 + $0x18] sm:$0xff] }
  0x4e   : > { %v986_v23 = vld [vmem:[%s1470_s10 + $0x44] sm:$0xf0]  ;;  %v985_v25 = vld [vmem:[%s1470_s10 + $0x44] sm:$0xf]  ;;  %v885_v26 = vld [vmem:[%s1470_s10 + $0x48] sm:$0xf0] }
  0x4f   : > { %s1676_s29 = smov (!%p836_p0, %s364_s29), %s1674_s21  ;;  %523 = vmatpush.bf16.msra.mxu0 %v900_v11  ;;  %v884_v27 = vor.u32 %v986_v23, %v883_v22  ;;  %v875_v28 = vld [vmem:[%s1470_s10 + $0x30] sm:$0xf]  ;;  %v984_v29 = vld [vmem:[%s1470_s10 + $0x34] sm:$0xf0]  ;;  %v888_v30 = vor.u32 %v985_v25, %v885_v26  ;;  %v973_v31 = vld [vmem:[%s1464_s30 + $0x20] sm:$0xff]  ;;  %vm569_vm0 = vcmask 261120  }
  0x50   : > { %637 = vmatpush.bf16.msra.mxu3 %v975_v14  ;;  %s837_s12 = sshll.u32 %s1676_s29, 5  ;;  %v983_v33 = vld [vmem:[%s1470_s10 + $0x34] sm:$0xf]  ;;  %v877_v34 = vld [vmem:[%s1470_s10 + $0x38] sm:$0xf0]  ;;  %v876_v36 = vor.u32 %v984_v29, %v875_v28  ;;  %v993_v43 = vld [vmem:[%s1486_s6] sm:$0xff] }
  0x51   : > { %537 = vmatpush.bf16.msra.mxu1 %v904_v17  ;;  %s384_s8 = sshra.s32 %s837_s12, 3  ;;  %v867_v37 = vld [vmem:[%s1470_s10 + $0x20] sm:$0xf]  ;;  %v982_v38 = vld [vmem:[%s1470_s10 + $0x24] sm:$0xf0]  ;;  %v880_v39 = vor.u32 %v983_v33, %v877_v34  ;;  %s1545_s6 = sshll.u32 %s1283_s24, 4 }
  0x52   : > { %s843_s11 = sshll.u32 %s384_s8, 2  ;;  %v981_v41 = vld [vmem:[%s1470_s10 + $0x24] sm:$0xf]  ;;  %v869_v42 = vld [vmem:[%s1470_s10 + $0x28] sm:$0xf0]  ;;  %v868_v44 = vor.u32 %v982_v38, %v867_v37  ;;  %s382_s7 = sadd.s32 %s1545_s6, %s837_s12  ;;  %v971_v49 = vld [vmem:[%s1464_s30 + $0x10] sm:$0xff] }
  0x53   : > { %524 = vmatpush.bf16.msra.mxu0 %v892_v20  ;;  %s387_s9 = scalar_lea.vmem [#allocation2], %s843_s11  ;;  %v859_v45 = vld [vmem:[%s1470_s10 + $0x10] sm:$0xf]  ;;  %v980_v46 = vld [vmem:[%s1470_s10 + $0x14] sm:$0xf0]  ;;  %v872_v47 = vor.u32 %v981_v41, %v869_v42  ;;  %s392_s15 = sshra.s32 %s382_s7, 3 }
  0x54   : > { %638 = vmatpush.bf16.msra.mxu3 %v974_v21  ;;  %v967_v32 = vld [vmem:[%s387_s9 + $0x8] sm:$0xff]  ;;  %v966_v35 = vld [vmem:[%s387_s9] sm:$0xff]  ;;  %v860_v48 = vor.u32 %v980_v46, %v859_v45  ;;  %s844_s2 = sshll.u32 %s392_s15, 2  ;;  %v979_v52 = vld [vmem:[%s1470_s10 + $0x14] sm:$0xf]  ;;  %s367_s24 = sadd.s32 1, %s1287_s25 }
  0x55   : > { %538 = vmatpush.bf16.msra.mxu1 %v896_v24  ;;  %579 = vmatpush.bf16.msra.mxu2 %v967_v32  ;;  %v851_v50 = vld [vmem:[%s1470_s10] sm:$0xf]  ;;  %v978_v51 = vld [vmem:[%s1470_s10 + $0x4] sm:$0xf0]  ;;  %v861_v54 = vld [vmem:[%s1470_s10 + $0x18] sm:$0xf0]  ;;  %s676_s12 = scalar_lea.hbm %s1626_s5, %s1545_s6 }
  0x56   : > { %v852_v53 = vor.u32 %v978_v51, %v851_v50  ;;  %v970_v55 = vld [vmem:[%s1464_s30 + $0x8] sm:$0xff]  ;;  %v864_v56 = vor.u32 %v979_v52, %v861_v54  ;;  %s395_s17 = scalar_lea.vmem [#allocation2], %s844_s2  ;;  %v977_v58 = vld [vmem:[%s1470_s10 + $0x4] sm:$0xf]  ;;  %s369_s20 = ssub.s32 0, %s367_s24 }
  0x57   : > { %525 = vmatpush.bf16.msra.mxu0 %v884_v27  ;;  %v968_v57 = vld [vmem:[%s395_s17] sm:$0xff]  ;;  %v853_v59 = vld [vmem:[%s1470_s10 + $0x8] sm:$0xf0]  ;;  %s838_s26 = smin.u32 %s369_s20, %s367_s24  ;;  %p368_p1 = scmp.lt.s32.totalorder %s367_s24, 0 }
  0x58   : > { %639 = vmatpush.bf16.msra.mxu3 %v973_v31  ;;  %v856_v60 = vor.u32 %v977_v58, %v853_v59  ;;  %v969_v61 = vld [vmem:[%s1464_s30] sm:$0xff]  ;;  %s371_s14 = sand.u32 1, %s838_s26   ;;  %s1567_s11 = sshll.u32 %s676_s12, 4  ;;  %s680_s11 = int_to_ptr.hbm [resolvable:$true] %s1567_s11 }
  0x59   : > { %539 = vmatpush.bf16.msra.mxu1 %v888_v30  ;;  %580 = vmatpush.bf16.msra.mxu2 %v966_v35  ;;  %s372_s10 = ssub.s32 0, %s371_s14  ;;  %v430_v1 = vld [vmem:[%s1491_s13] sm:$0x3]  ;;  %s677_s9 = sshll.u32 %s1494_s23, 4  ;;  %s678_s9 = int_to_ptr.vmem [resolvable:$true] %s677_s9 }
  0x5a   : > { %s1678_s10 = smov (!%p368_p1, %s372_s10), %s371_s14  ;;  %v432_v2 = vperm.slane %v430_v1, 0  ;;  %v433_v5 = vperm.slane %v430_v1, 1  ;;  %s1187_s15 = sshra.s32 %s680_s11, 4  ;;  %s1188_s15 = int_to_ptr.hbm [resolvable:$true] %s1187_s15 }
  0x5b   : > { %526 = vmatpush.bf16.msra.mxu0 %v876_v36  ;;  %p840_p4 = scmp.lt.s32.totalorder %s1678_s10, 0  ;;  %s378_s30 = sadd.s32 2, %s1678_s10 }
  0x5c   : > { %640 = vmatpush.bf16.msra.mxu3 %v972_v40  ;;  %925 = vmatmul.msk.bf16.vlgmr.msra.gmra.mxu2 %vm569_vm0, %v993_v43  ;;  %s1189_s2 = scalar_lea.hbm %s1188_s15, 16  ;;  %s1193_s20 = scalar_lea.hbm %s1626_s5, 32 }
  0x5d   : > { %540 = vmatpush.bf16.msra.mxu1 %v880_v39  ;;  %s1680_s30 = smov (!%p840_p4, %s378_s30), %s1678_s10  ;;  %p1190_p5 = scmp.ne.s32.totalorder %s1188_s15, %s1189_s2 }
  0x5e   : > { %s841_s25 = sshll.u32 %s1680_s30, 5  ;;  %p1194_p3 = scmp.lt.s32.totalorder %s1188_s15, %s1626_s5 }
  0x5f   : > { %527 = vmatpush.bf16.msra.mxu0 %v868_v44  ;;  %s383_s21 = sadd.s32 %s1545_s6, %s841_s25  ;;  %s665_s6 = scalar_lea.sflag [#allocation5], %s325_s18 }
  0x60   : > { %641 = vmatpush.bf16.msra.mxu3 %v971_v49  ;;  %s656_s8 = sshra.s32 %s383_s21, 3  ;;  %p1191_p6 = pnand %p1190_p5, %p1425_p12 }
  0x61   : > { %541 = vmatpush.bf16.msra.mxu1 %v872_v47  ;;  %s958_s7 = sshll.u32 %s656_s8, 2  ;;  %p1195_p9 = scmp.lt.s32.totalorder %s1193_s20, %s1189_s2 }
  0x62   : > { %p1192_p8 = pneg %p1191_p6 }
  0x63   : > { %528 = vmatpush.bf16.msra.mxu0 %v860_v48  ;;  %p1196_p10 = por %p1195_p9, %p1194_p3 }
  0x64   : > { %642 = vmatpush.bf16.msra.mxu3 %v970_v55 }
  0x65   : > { %542 = vmatpush.bf16.msra.mxu1 %v864_v56  ;;  %p1197_p7 = pnand %p1196_p10, %p1192_p8 }
  0x67   : > { %529 = vmatpush.bf16.msra.mxu0 %v852_v53 }
  0x68   : > { %643 = vmatpush.bf16.msra.mxu3 %v969_v61 }
  0x69   : > { %543 = vmatpush.bf16.msra.mxu1 %v856_v60 }
  0x6a   : > { %530 = vmatmul.bf16.vlgmr.msra.gmra.mxu0 %v968_v57 }
  0x6c   : > { %544 = vmatmul.bf16.vlgmr.msra.gmra.mxu1 %v968_v57 }
  0xdf   : > { %v582_v62 = vpop.f32.mrf.mxu2 }
  0xe7   : > { %v584_v63 = vpop.f32.mrf.mxu2  ;;  %v531_v3 = vpop.f32.mrf.mxu0 }
  0xe8   : > { %v587_v0 = vpack.c.bf16 %v584_v63, %v582_v62  ;;  %v532_v4 = vadd.f32 %v531_v3, %v432_v2 }
  0xe9   : > { %v545_v6 = vpop.f32.mrf.mxu1 }
  0xea   : > { %644 = vmatmul.bf16.vlgmr.msra.gmra.mxu3 %v587_v0  ;;  %v546_v8 = vadd.f32 %v545_v6, %v433_v5 }
  0xef   : > { %v533_v11 = vpop.f32.mrf.mxu0 }
  0xf0   : > { %v534_v13 = vadd.f32 %v533_v11, %v432_v2 }
  0xf1   : > { %v547_v14 = vpop.f32.mrf.mxu1 }
  0xf2   : > { %v548_v17 = vadd.f32 %v547_v14, %v433_v5 }
 0x16d   : > { %v645_v7 = vpop.f32.mrf.mxu3 }
 0x16e   : > { %v646_v9 = vadd.f32 %v645_v7, %v532_v4 }
 0x170   : > { %v650_v10 = vmax.f32 %v646_v9, 0.0 }
 0x172   : > { %v652_v12 = vadd.f32 %v650_v10, %v546_v8 }
 0x174   : > { %662 = vst [vmem:[%s1494_s23] sm:$0xff] %v652_v12 }
 0x175   : > { %v647_v15 = vpop.f32.mrf.mxu3 }
 0x176   : > { %v648_v16 = vadd.f32 %v647_v15, %v534_v13 }
 0x178   : > { %v651_v18 = vmax.f32 %v648_v16, 0.0 }
 0x17a   : > { %v653_v19 = vadd.f32 %v651_v18, %v548_v17 }
 0x17c   : > { %v998_v20 = vpack.c.bf16 %v653_v19, %v652_v12  ;;  %663 = vst [vmem:[%s1494_s23 + $0x8] sm:$0xff] %v653_v19 }
 0x17d   : > { %1200 = shalt.err (!%p1197_p7)
}
 0x17e   : > { %s1305_s18 = smov 128   ;;  %s1306_s23 = smov 8  }
 0x17f   : > { %1004 = dma.vmem_to_hbm [thread:$0]  (%p1425_p12), %s678_s9, 256, %s680_s11, %s665_s6, %s1305_s18, %s1305_s18, %s1306_s23  }
 0x180   : > { %s659_s10 = scalar_lea.vmem [#allocation2], %s958_s7 }
 0x181   : > { %999 = vst [vmem:[%s659_s10] sm:$0xff] %v998_v20  }
 0x182 PF: > { %s1650_s30 = sld [smem:[#allocation12_spill]]  ;;  %p1018_p11 = scmp.ge.s32.totalorder %s1299_s28, 2 }
 0x184   : > { %p1014_p13 = pnand %p1018_p11, %p1435_p2 }
 0x186   : > { %p1015_p0 = pneg %p1014_p13 }
 0x188   : > { %s694_s21 = sand.u32 1, %s1650_s30  }
 0x189   : > { %s695_s29 = scalar_lea.sflag [#allocation5], %s694_s21 }
 0x18a   : > { %1254 = dma.done.wait (%p1015_p0), %s695_s29, 256  }
 0x18b   : > { %1256 = vsyncadd (%p1015_p0), %s695_s29, 4294967040  ;;  %s24_s28 = sadd.s32 1, %s1299_s28   ;;  %s1652_s16 = sld [smem:[#allocation13_spill]] }
 0x18c   : > { %p21_p1 = scmp.ge.s32.totalorder %s24_s28, 8   ;;  %s1653_s20 = sld [smem:[#allocation18_spill]] }
 0x18d   : > { %s1654_s13 = sld [smem:[#allocation14_spill]]  ;;  %s1659_s18 = smov %s1263_s19 }
 0x18e   : > { %s1655_s23 = sld [smem:[#allocation19_spill]]  ;;  %s1661_s21 = smov %s1275_s22 }
 0x18f   : > { %s1656_s24 = sld [smem:[#allocation15_spill]]  ;;  %s1663_s25 = smov %s1295_s27 }
 0x190   : > { %s1657_s26 = sld [smem:[#allocation16_spill]] }
 0x191   : > { %s1658_s12 = sld [smem:[#allocation17_spill]]  ;;  %s1660_s19 = smov %s1652_s16 }
 0x193   : > { %s1662_s22 = smov %s1654_s13  ;;  %23 = sbr.rel (!%p21_p1) target bundleno = 13 (0xd), region = 111 }
 0x197   : > { %s1664_s27 = smov %s1658_s12 }
 0x198   :  { %701 = vsyncpa [#allocation4], 1 }
 0x199   :  { %703 = vsyncpa [#allocation4 + $0x1], 1 }
 0x19a   :  { %704 = vsyncpa [#allocation7], 1 }
 0x19b   :  { %706 = vsyncpa [#allocation7 + $0x1], 1 }
 0x19c   :  { %707 = vsyncpa [#allocation5], 1 }
 0x19d   :  { %709 = vsyncpa [#allocation5 + $0x1], 1 }

</bundles_post_ra>
